<compile_context>
chip_gen: v5e
topology: v5e:2x2
jax: 0.10.0
libtpu: 0.0.40
codegen_flags: <defaults>
</compile_context>

<pallas_src>
import functools

import jax
import jax.numpy as jnp
from jax.experimental import pallas as pl
from jax.experimental.pallas import tpu as pltpu

# Make MXU matmuls f32-accurate so the Pallas path matches the XLA reference.
jax.config.update("jax_default_matmul_precision", "highest")


# ---------------------------------------------------------------------------
# VGG19 "features" architecture table (torchvision layer indices).
# ---------------------------------------------------------------------------
_VGG19_CFG = (64, 64, "M", 128, 128, "M", 256, 256, 256, 256, "M",
              512, 512, 512, 512, "M", 512, 512, 512, 512, "M")


def _vgg19_ops():
    """List of ('conv', cin, cout) / ('relu',) / ('pool',); position == features.N."""
    ops = []
    cin = 3
    for v in _VGG19_CFG:
        if v == "M":
            ops.append(("pool",))
        else:
            ops.append(("conv", cin, v))
            ops.append(("relu",))
            cin = v
    return ops


def _init_params(key, ops, node_idx):
    """Deterministic He-initialized weights for every conv up to the node."""
    params = []
    for i, op in enumerate(ops):
        if i > node_idx:
            break
        if op[0] == "conv":
            _, cin, cout = op
            key, kw, kb = jax.random.split(key, 3)
            std = (2.0 / (9 * cin)) ** 0.5
            w = jax.random.normal(kw, (3, 3, cin, cout), jnp.float32) * std
            b = jax.random.normal(kb, (cout,), jnp.float32) * 0.01
            params.append({"w_hwio": w,
                           "w9": w.reshape(9, cin, cout),   # tap-major (ky*3+kx, Cin, Cout)
                           "b": b,
                           "b_row": b.reshape(1, cout)})
        else:
            params.append(None)
    return params


# ---------------------------------------------------------------------------
# Kernels
# ---------------------------------------------------------------------------
def _normalize_kernel(x_ref, m_ref, s_ref, o_ref):
    # x: (1, H*W, C) channels-last; mean/std: (1, C)
    o_ref[0] = (x_ref[0] - m_ref[...]) / s_ref[...]


def _conv3x3_kernel(x_ref, w_ref, b_ref, o_ref, *, H, W, apply_relu):
    """3x3 / pad-1 conv on a spatially flattened (H*W, Cin) tile.

    out[p] = sum_t shift_t(x)[p] @ w[t] + b, where shift_t brings the (dy, dx)
    neighbour of pixel p into row p and zero-masks out-of-image neighbours
    (zero padding == PyTorch Conv2d(padding=1)).  ReLU optionally fused.
    """
    HW = H * W
    cout = w_ref.shape[2]
    x = x_ref[0]                                             # (HW, Cin) f32

    # Hoisted pixel coordinates for the boundary masks.
    pos = jax.lax.broadcasted_iota(jnp.int32, (HW, 1), 0)
    row = pos // W
    col = pos - row * W

    acc = jnp.zeros((HW, cout), jnp.float32)
    for t in range(9):                                       # statically unrolled taps
        dy = t // 3 - 1
        dx = t % 3 - 1
        if dy == 0 and dx == 0:
            patch = x
        else:
            # patch[p] = x[(p + dy*W + dx) mod HW], with wrapped rows masked out.
            k = (dy * W + dx) % HW
            patch = x if k == 0 else jnp.concatenate([x[k:, :], x[:k, :]], axis=0)
            conds = []
            if dy == -1:
                conds.append(row >= 1)
            elif dy == 1:
                conds.append(row < H - 1)
            if dx == -1:
                conds.append(col >= 1)
            elif dx == 1:
                conds.append(col < W - 1)
            valid = conds[0]
            for c in conds[1:]:
                valid = valid & c
            patch = jnp.where(valid, patch, 0.0)
        acc = acc + jnp.dot(patch, w_ref[t], preferred_element_type=jnp.float32)

    acc = acc + b_ref[...]                                   # (1, Cout) broadcast
    if apply_relu:
        acc = jnp.maximum(acc, 0.0)
    o_ref[0] = acc


def _max4_kernel(a_ref, b_ref, c_ref, d_ref, o_ref):
    # 2x2 max-pool: elementwise max of the 4 parity sub-grids.
    o_ref[0] = jnp.maximum(jnp.maximum(a_ref[0], b_ref[0]),
                           jnp.maximum(c_ref[0], d_ref[0]))


def _l1_partial_kernel(x_ref, y_ref, o_ref):
    # Per-image partial sum of |x - y|; mean is taken in the wrapper.
    o_ref[0, 0] = jnp.sum(jnp.abs(x_ref[0] - y_ref[0]))


# ---------------------------------------------------------------------------
# Cached pallas_call builders (one compile per distinct shape).
# ---------------------------------------------------------------------------
@functools.lru_cache(maxsize=None)
def _normalize_fn(N, HW, C):
    grid_spec = pltpu.PrefetchScalarGridSpec(
        num_scalar_prefetch=0, grid=(N,),
        in_specs=[pl.BlockSpec((1, HW, C), lambda n: (n, 0, 0)),
                  pl.BlockSpec((1, C), lambda n: (0, 0)),
                  pl.BlockSpec((1, C), lambda n: (0, 0))],
        out_specs=pl.BlockSpec((1, HW, C), lambda n: (n, 0, 0)))
    return jax.jit(pl.pallas_call(
        _normalize_kernel,
        out_shape=jax.ShapeDtypeStruct((N, HW, C), jnp.float32),
        grid_spec=grid_spec,
        compiler_params=pltpu.CompilerParams(dimension_semantics=("parallel",)),
    ))


@functools.lru_cache(maxsize=None)
def _conv3x3_fn(N, H, W, cin, cout, apply_relu):
    HW = H * W
    kernel = functools.partial(_conv3x3_kernel, H=H, W=W, apply_relu=apply_relu)
    grid_spec = pltpu.PrefetchScalarGridSpec(
        num_scalar_prefetch=0, grid=(N,),
        in_specs=[pl.BlockSpec((1, HW, cin), lambda n: (n, 0, 0)),
                  pl.BlockSpec((9, cin, cout), lambda n: (0, 0, 0)),
                  pl.BlockSpec((1, cout), lambda n: (0, 0))],
        out_specs=pl.BlockSpec((1, HW, cout), lambda n: (n, 0, 0)))
    return jax.jit(pl.pallas_call(
        kernel,
        out_shape=jax.ShapeDtypeStruct((N, HW, cout), jnp.float32),
        grid_spec=grid_spec,
        compiler_params=pltpu.CompilerParams(
            dimension_semantics=("parallel",),
            # Room for double-buffered 9*512*512 f32 weights (safe on v5e/v6e/v7x).
            vmem_limit_bytes=40 * 1024 * 1024),
    ))


@functools.lru_cache(maxsize=None)
def _max4_fn(N, HW, C):
    grid_spec = pltpu.PrefetchScalarGridSpec(
        num_scalar_prefetch=0, grid=(N,),
        in_specs=[pl.BlockSpec((1, HW, C), lambda n: (n, 0, 0))] * 4,
        out_specs=pl.BlockSpec((1, HW, C), lambda n: (n, 0, 0)))
    return jax.jit(pl.pallas_call(
        _max4_kernel,
        out_shape=jax.ShapeDtypeStruct((N, HW, C), jnp.float32),
        grid_spec=grid_spec,
        compiler_params=pltpu.CompilerParams(dimension_semantics=("parallel",)),
    ))


@functools.lru_cache(maxsize=None)
def _l1_fn(N, F, C):
    grid_spec = pltpu.PrefetchScalarGridSpec(
        num_scalar_prefetch=0, grid=(N,),
        in_specs=[pl.BlockSpec((1, F, C), lambda n: (n, 0, 0)),
                  pl.BlockSpec((1, F, C), lambda n: (n, 0, 0))],
        out_specs=pl.BlockSpec((1, 1), lambda n: (n, 0),
                               memory_space=pltpu.MemorySpace.SMEM))
    return jax.jit(pl.pallas_call(
        _l1_partial_kernel,
        out_shape=jax.ShapeDtypeStruct((N, 1), jnp.float32),
        grid_spec=grid_spec,
        compiler_params=pltpu.CompilerParams(dimension_semantics=("parallel",)),
    ))


# ---------------------------------------------------------------------------
# Wrapper: VGG19 feature extraction + content loss.
# ---------------------------------------------------------------------------
def _maxpool2x2(x_flat, H, W):
    N, _, C = x_flat.shape
    Ho, Wo = H // 2, W // 2
    x4 = x_flat.reshape(N, H, W, C)
    parts = [x4[:, dy::2, dx::2, :].reshape(N, Ho * Wo, C)   # layout plumbing only
             for dy in (0, 1) for dx in (0, 1)]
    return _max4_fn(N, Ho * Wo, C)(*parts), Ho, Wo


def _extract_features(x_flat, H, W, ops, params, node_idx):
    """Run VGG19 features[0 .. node_idx] on an (N, H*W, C) channels-last tensor."""
    i = 0
    while i <= node_idx:
        op = ops[i]
        if op[0] == "conv":
            fuse_relu = (i + 1 <= node_idx) and ops[i + 1][0] == "relu"
            _, cin, cout = op
            N = x_flat.shape[0]
            x_flat = _conv3x3_fn(N, H, W, cin, cout, fuse_relu)(
                x_flat, params[i]["w9"], params[i]["b_row"])
            i += 2 if fuse_relu else 1
        elif op[0] == "pool":
            x_flat, H, W = _maxpool2x2(x_flat, H, W)
            i += 1
        else:  # bare ReLU — unreachable for VGG19 (ReLU is always fused above)
            x_flat = jnp.maximum(x_flat, 0.0)
            i += 1
    return x_flat, H, W


def content_loss(sr_nchw, hr_nchw, params, ops, node_idx, mean, std):
    """Pallas implementation of ContentLoss.forward(sr_tensor, hr_tensor)."""
    assert sr_nchw.shape == hr_nchw.shape
    N, C, H, W = sr_nchw.shape

    # Shared feature trunk: run SR and HR through VGG as one 2N batch.
    x = jnp.concatenate([sr_nchw, hr_nchw], axis=0)
    x = jnp.transpose(x, (0, 2, 3, 1)).reshape(2 * N, H * W, C)   # channels-last

    x = _normalize_fn(2 * N, H * W, C)(x, mean.reshape(1, C), std.reshape(1, C))
    feat, Hf, Wf = _extract_features(x, H, W, ops, params, node_idx)
    Cf = feat.shape[-1]

    sr_feat, hr_feat = feat[:N], feat[N:]
    partials = _l1_fn(N, Hf * Wf, Cf)(sr_feat, hr_feat)            # (N, 1)
    return jnp.sum(partials) / jnp.float32(N * Hf * Wf * Cf)


# ---------------------------------------------------------------------------
# Pure-JAX/XLA reference mirroring the PyTorch module.
# ---------------------------------------------------------------------------
def _ref_content_loss(sr_nchw, hr_nchw, params, ops, node_idx, mean, std):
    def normalize(x):
        return (x - mean[None, :, None, None]) / std[None, :, None, None]

    def features(x_nchw):
        x = jnp.transpose(normalize(x_nchw), (0, 2, 3, 1))   # NHWC
        for i, op in enumerate(ops):
            if i > node_idx:
                break
            if op[0] == "conv":
                p = params[i]
                x = jax.lax.conv_general_dilated(
                    x, p["w_hwio"], window_strides=(1, 1), padding="SAME",
                    dimension_numbers=("NHWC", "HWIO", "NHWC"))
                x = x + p["b"][None, None, None, :]
            elif op[0] == "relu":
                x = jnp.maximum(x, 0.0)
            else:
                x = jax.lax.reduce_window(
                    x, -jnp.inf, jax.lax.max,
                    window_dimensions=(1, 2, 2, 1),
                    window_strides=(1, 2, 2, 1), padding="VALID")
        return x

    return jnp.mean(jnp.abs(features(sr_nchw) - features(hr_nchw)))


if __name__ == "__main__":
    # Module config as used for SRGAN: node "features.35", ImageNet mean/std.
    node = "features.35"
    node_idx = int(node.split(".")[1])
    mean = jnp.array([0.485, 0.456, 0.406], jnp.float32)
    std = jnp.array([0.229, 0.224, 0.225], jnp.float32)

    ops = _vgg19_ops()
    key = jax.random.PRNGKey(0)
    kp, ksr, khr = jax.random.split(key, 3)
    params = _init_params(kp, ops, node_idx)

    N, C, H, W = 2, 3, 32, 32                       # small deterministic inputs
    sr = jax.random.uniform(ksr, (N, C, H, W), jnp.float32)
    hr = jax.random.uniform(khr, (N, C, H, W), jnp.float32)

    loss = jax.block_until_ready(content_loss(sr, hr, params, ops, node_idx, mean, std))
    ref = jax.block_until_ready(_ref_content_loss(sr, hr, params, ops, node_idx, mean, std))

    if not jnp.allclose(loss, ref, rtol=2e-3, atol=1e-6):
        raise AssertionError(f"mismatch: pallas={loss} ref={ref}")
    print("KERNEL_OK")
</pallas_src>

<mosaic_0001>
module attributes {stable_mosaic.version = 11 : i64} {
  func.func @_normalize_kernel(%arg0: i32, %arg1: memref<1x1024x3xf32, #tpu.memory_space<vmem>>, %arg2: memref<1x3xf32, #tpu.memory_space<vmem>>, %arg3: memref<1x3xf32, #tpu.memory_space<vmem>>, %arg4: memref<1x1024x3xf32, #tpu.memory_space<vmem>>) attributes {dimension_semantics = [#tpu.dimension_semantics<parallel>], iteration_bounds = array<i64: 4>, scalar_prefetch = 0 : i64, scratch_operands = 0 : i64, tpu.core_type = #tpu.core_type<tc>, window_params = [{transform_indices = @transform_0, window_bounds = array<i64: 1, 1024, 3>}, {pipeline_mode = #tpu.pipeline_mode<synchronous>, transform_indices = @transform_1, window_bounds = array<i64: 1, 3>}, {pipeline_mode = #tpu.pipeline_mode<synchronous>, transform_indices = @transform_2, window_bounds = array<i64: 1, 3>}, {transform_indices = @transform_3, window_bounds = array<i64: 1, 1024, 3>}]} {
    %c0 = arith.constant 0 : index
    %c0_0 = arith.constant 0 : index
    %c0_1 = arith.constant 0 : index
    %0 = vector.load %arg1[%c0, %c0_0, %c0_1] : memref<1x1024x3xf32, #tpu.memory_space<vmem>>, vector<1x1024x3xf32>
    %1 = vector.shape_cast %0 : vector<1x1024x3xf32> to vector<1024x3xf32>
    %c0_2 = arith.constant 0 : index
    %c0_3 = arith.constant 0 : index
    %2 = vector.load %arg2[%c0_2, %c0_3] : memref<1x3xf32, #tpu.memory_space<vmem>>, vector<1x3xf32>
    %3 = vector.broadcast %2 : vector<1x3xf32> to vector<1024x3xf32>
    %4 = arith.subf %1, %3 : vector<1024x3xf32>
    %c0_4 = arith.constant 0 : index
    %c0_5 = arith.constant 0 : index
    %5 = vector.load %arg3[%c0_4, %c0_5] : memref<1x3xf32, #tpu.memory_space<vmem>>, vector<1x3xf32>
    %6 = vector.broadcast %5 : vector<1x3xf32> to vector<1024x3xf32>
    %7 = arith.divf %4, %6 : vector<1024x3xf32>
    %c0_6 = arith.constant 0 : index
    %c0_7 = arith.constant 0 : index
    %c0_8 = arith.constant 0 : index
    %8 = vector.load %arg4[%c0_6, %c0_7, %c0_8] : memref<1x1024x3xf32, #tpu.memory_space<vmem>>, vector<1x1024x3xf32>
    %9 = vector.shape_cast %8 : vector<1x1024x3xf32> to vector<1024x3xf32>
    %10 = vector.shape_cast %7 : vector<1024x3xf32> to vector<1x1024x3xf32>
    tpu.vector_store %arg4[%c0_6, %c0_7, %c0_8], %10 {strides = array<i32>} : memref<1x1024x3xf32, #tpu.memory_space<vmem>>, vector<1x1024x3xf32>,
    return
  }
  func.func @transform_0(%arg0: i32) -> (i32, i32, i32) {
    %c0_i32 = arith.constant 0 : i32
    %c0_i32_0 = arith.constant 0 : i32
    %c0_i32_1 = arith.constant 0 : i32
    return %arg0, %c0_i32, %c0_i32_0 : i32, i32, i32
  }
  func.func @transform_1(%arg0: i32) -> (i32, i32) {
    %c0_i32 = arith.constant 0 : i32
    %c0_i32_0 = arith.constant 0 : i32
    %c0_i32_1 = arith.constant 0 : i32
    return %c0_i32, %c0_i32_0 : i32, i32
  }
  func.func @transform_2(%arg0: i32) -> (i32, i32) {
    %c0_i32 = arith.constant 0 : i32
    %c0_i32_0 = arith.constant 0 : i32
    %c0_i32_1 = arith.constant 0 : i32
    return %c0_i32, %c0_i32_0 : i32, i32
  }
  func.func @transform_3(%arg0: i32) -> (i32, i32, i32) {
    %c0_i32 = arith.constant 0 : i32
    %c0_i32_0 = arith.constant 0 : i32
    %c0_i32_1 = arith.constant 0 : i32
    return %arg0, %c0_i32, %c0_i32_0 : i32, i32, i32
  }
}

</mosaic_0001>

<bundles_post_ra>
// kernel: tpu_custom_call.1
= control target key start
LH: loop header
LB: loop body
LE: loop exit
PB: predicated region body
PF: predicated region fallthrough
CT: control target
= control target key end

     0   :  { %s815_s12 = smov 0   ;;  %s1501_s0 = inlined_call_operand.vmem [shape: f32[4,1024,3], index: 0, kind: input, shape index: {}]   ;;  %s1502_s1 = inlined_call_operand.vmem [shape: f32[1,3], index: 1, kind: input, shape index: {}]   ;;  %s1503_s2 = inlined_call_operand.vmem [shape: f32[1,3], index: 2, kind: input, shape index: {}]   ;;  %s1504_s3 = inlined_call_operand.vmem [shape: f32[4,1024,3], index: 3, kind: output, shape index: {}]  }
   0x1 LB: > { %s761_s13 = sadd.s32 4294967295, %s793_s12   ;;  %p765_p0 = scmp.ge.s32.totalorder %s793_s12, 1  ;;  %s793_s12 = sphi %s815_s12, %s13_s12  }
   0x2   : > { %p137_p1 = scmp.lt.s32.totalorder %s793_s12, 5 }
   0x4   : > { %p138_p2 = pnand %p765_p0, %p137_p1 }
   0x5   : > { %p161_p3 = scmp.lt.s32.totalorder (!%p138_p2), %s761_s13, 3 }
   0x6   : > { %141 = sbr.rel (%p138_p2) target bundleno = 159 (0x9f), region = 32 }
   0xb   : > { %v783_v0 = vld [vmem:[%s1503_s2] ss:$0 sm:$0xff]  ;;  %s1508_s13 = smov (!%p161_p3, %s761_s13), 3  ;;  %vm577_vm4 = vcmask 23552  }
   0xc   : > { %784 = vrcp.f32 %v783_v0  ;;  %s772_s16 = sshll.u32 %s1508_s13, 10  ;;  %v444_v3 = vand.u32 2147483647, %v783_v0  ;;  %v446_v4 = vand.u32 2147483648, %v783_v0  ;;  %v839_v5 = vld [vmem:[%s1502_s1] ss:$0 sm:$0xff]  ;;  %vm440_vm0 = vweird.f32 %v783_v0 }
   0xd   : > { %s834_s19 = scalar_lea.vmem %s1501_s0, %s772_s16  ;;  %s865_s24 = scalar_lea.vmem %s1504_s3, %s772_s16 }
   0xe   : > { %v171_v7 = vld [vmem:[%s834_s19] sm:$0xff]  ;;  %v172_v8 = vld [vmem:[%s834_s19 + $0x8] sm:$0xff]  ;;  %v173_v9 = vld [vmem:[%s834_s19 + $0x10] sm:$0xff]  ;;  %vm445_vm3 = vcmp.eq.f32.partialorder %v444_v3, 8.507059e+37  ;;  %v447_v13 = vor.u32 1.1754944e-38, %v446_v4 }
   0xf   : > { %v174_v11 = vld [vmem:[%s834_s19 + $0x18] sm:$0xff]  ;;  %v175_v14 = vld [vmem:[%s834_s19 + $0x20] sm:$0xff]  ;;  %v303_v15 = vsub.f32 %v171_v7, %v839_v5  ;;  %v304_v17 = vsub.f32 %v172_v8, %v839_v5  ;;  %v305_v18 = vsub.f32 %v173_v9, %v839_v5  ;;  %v176_v19 = vld [vmem:[%s834_s19 + $0x28] sm:$0xff] }
  0x10   : > { %v306_v20 = vsub.f32 %v174_v11, %v839_v5  ;;  %v177_v21 = vld [vmem:[%s834_s19 + $0x30] sm:$0xff]  ;;  %v307_v23 = vsub.f32 %v175_v14, %v839_v5  ;;  %v178_v24 = vld [vmem:[%s834_s19 + $0x38] sm:$0xff]  ;;  %v308_v26 = vsub.f32 %v176_v19, %v839_v5  ;;  %v179_v27 = vld [vmem:[%s834_s19 + $0x40] sm:$0xff] }
  0x11   : > { %v309_v31 = vsub.f32 %v177_v21, %v839_v5  ;;  %v180_v32 = vld [vmem:[%s834_s19 + $0x48] sm:$0xff]  ;;  %v310_v34 = vsub.f32 %v178_v24, %v839_v5  ;;  %v181_v35 = vld [vmem:[%s834_s19 + $0x50] sm:$0xff]  ;;  %v311_v37 = vsub.f32 %v179_v27, %v839_v5  ;;  %v182_v38 = vld [vmem:[%s834_s19 + $0x58] sm:$0xff] }
  0x12   : > { %v785_v1 = vpop.eup %784  ;;  %v312_v40 = vsub.f32 %v180_v32, %v839_v5  ;;  %v183_v41 = vld [vmem:[%s834_s19 + $0x60] sm:$0xff]  ;;  %v313_v43 = vsub.f32 %v181_v35, %v839_v5  ;;  %v184_v44 = vld [vmem:[%s834_s19 + $0x68] sm:$0xff]  ;;  %v314_v46 = vsub.f32 %v182_v38, %v839_v5  ;;  %v185_v47 = vld [vmem:[%s834_s19 + $0x70] sm:$0xff] }
  0x13   : > { %v436_v2 = vmul.f32 %v785_v1, %v783_v0  ;;  %vm441_vm1 = vweird.f32 %v785_v1  ;;  %v315_v49 = vsub.f32 %v183_v41, %v839_v5  ;;  %v186_v50 = vld [vmem:[%s834_s19 + $0x78] sm:$0xff]  ;;  %v316_v52 = vsub.f32 %v184_v44, %v839_v5  ;;  %v187_v53 = vld [vmem:[%s834_s19 + $0x80] sm:$0xff]  ;;  %v188_v56 = vld [vmem:[%s834_s19 + $0x88] sm:$0xff] }
  0x14   : > { %vm845_vm2 = vmor %vm440_vm0, %vm441_vm1  ;;  %v317_v55 = vsub.f32 %v185_v47, %v839_v5  ;;  %v318_v58 = vsub.f32 %v186_v50, %v839_v5  ;;  %v189_v59 = vld [vmem:[%s834_s19 + $0x90] sm:$0xff]  ;;  %v319_v61 = vsub.f32 %v187_v53, %v839_v5  ;;  %v190_v62 = vld [vmem:[%s834_s19 + $0x98] sm:$0xff]  ;;  %v320_v0 = vsub.f32 %v188_v56, %v839_v5 }
  0x15   : > { %v437_v6 = vsub.f32 1.0, %v436_v2  ;;  %v321_v3 = vsub.f32 %v189_v59, %v839_v5  ;;  %v192_v4 = vld [vmem:[%s834_s19 + $0xa8] sm:$0xff]  ;;  %v322_v7 = vsub.f32 %v190_v62, %v839_v5  ;;  %v193_v8 = vld [vmem:[%s834_s19 + $0xb0] sm:$0xff]  ;;  %v194_v11 = vld [vmem:[%s834_s19 + $0xb8] sm:$0xff] }
  0x16   : > { %v195_v14 = vld [vmem:[%s834_s19 + $0xc0] sm:$0xff]  ;;  %v326_v19 = vsub.f32 %v194_v11, %v839_v5 }
  0x17   : > { %v438_v10 = vmul.f32 %v785_v1, %v437_v6  ;;  %v199_v27 = vld [vmem:[%s834_s19 + $0xe0] sm:$0xff] }
  0x18   : > { %v331_v35 = vsub.f32 %v199_v27, %v839_v5 }
  0x19   : > { %v439_v16 = vadd.f32 %v785_v1, %v438_v10 }
  0x1b   : > { %v443_v22 = vsel %vm845_vm2, %v785_v1, %v439_v16  ;;  %v191_v1 = vld [vmem:[%s834_s19 + $0xa0] sm:$0xff]  ;;  %v325_v16 = vsub.f32 %v193_v8, %v839_v5 }
  0x1c   : > { %v867_v25 = vsel %vm445_vm3, %v447_v13, %v443_v22  ;;  %v323_v10 = vsub.f32 %v191_v1, %v839_v5  ;;  %v324_v13 = vsub.f32 %v192_v4, %v839_v5  ;;  %v327_v22 = vsub.f32 %v195_v14, %v839_v5 }
  0x1d   : > { %v449_v28 = vmul.f32 %v867_v25, %v303_v15  ;;  %v450_v29 = vmul.f32 %v867_v25, %v304_v17  ;;  %v451_v30 = vmul.f32 %v867_v25, %v305_v18  ;;  %v452_v33 = vmul.f32 %v867_v25, %v306_v20  ;;  %v196_v17 = vld [vmem:[%s834_s19 + $0xc8] sm:$0xff]  ;;  %v197_v20 = vld [vmem:[%s834_s19 + $0xd0] sm:$0xff] }
  0x1e   : > { %v453_v36 = vmul.f32 %v867_v25, %v307_v23  ;;  %v454_v39 = vmul.f32 %v867_v25, %v308_v26  ;;  %v455_v42 = vmul.f32 %v867_v25, %v309_v31  ;;  %v456_v45 = vmul.f32 %v867_v25, %v310_v34  ;;  %v198_v23 = vld [vmem:[%s834_s19 + $0xd8] sm:$0xff] }
  0x1f   : > { %578 = vst.msk [vmem:[%s865_s24] sm:$0xff] %vm577_vm4, %v449_v28  ;;  %v457_v48 = vmul.f32 %v867_v25, %v311_v37  ;;  %v458_v51 = vmul.f32 %v867_v25, %v312_v40  ;;  %v459_v54 = vmul.f32 %v867_v25, %v313_v43  ;;  %v460_v57 = vmul.f32 %v867_v25, %v314_v46 }
  0x20   : > { %579 = vst.msk [vmem:[%s865_s24 + $0x8] sm:$0xff] %vm577_vm4, %v450_v29  ;;  %v461_v60 = vmul.f32 %v867_v25, %v315_v49  ;;  %v462_v63 = vmul.f32 %v867_v25, %v316_v52  ;;  %v463_v2 = vmul.f32 %v867_v25, %v317_v55  ;;  %v464_v6 = vmul.f32 %v867_v25, %v318_v58 }
  0x21   : > { %580 = vst.msk [vmem:[%s865_s24 + $0x10] sm:$0xff] %vm577_vm4, %v451_v30  ;;  %v465_v9 = vmul.f32 %v867_v25, %v319_v61  ;;  %v466_v12 = vmul.f32 %v867_v25, %v320_v0  ;;  %v467_v15 = vmul.f32 %v867_v25, %v321_v3  ;;  %v468_v18 = vmul.f32 %v867_v25, %v322_v7  ;;  %v200_v30 = vld [vmem:[%s834_s19 + $0xe8] sm:$0xff] }
  0x22   : > { %581 = vst.msk [vmem:[%s865_s24 + $0x18] sm:$0xff] %vm577_vm4, %v452_v33  ;;  %v469_v21 = vmul.f32 %v867_v25, %v323_v10  ;;  %v470_v24 = vmul.f32 %v867_v25, %v324_v13  ;;  %v328_v26 = vsub.f32 %v196_v17, %v839_v5  ;;  %v471_v28 = vmul.f32 %v867_v25, %v325_v16  ;;  %v201_v33 = vld [vmem:[%s834_s19 + $0xf0] sm:$0xff] }
  0x23   : > { %582 = vst.msk [vmem:[%s865_s24 + $0x20] sm:$0xff] %vm577_vm4, %v453_v36  ;;  %v329_v29 = vsub.f32 %v197_v20, %v839_v5  ;;  %v472_v31 = vmul.f32 %v867_v25, %v326_v19  ;;  %v330_v32 = vsub.f32 %v198_v23, %v839_v5  ;;  %v473_v34 = vmul.f32 %v867_v25, %v327_v22  ;;  %v202_v36 = vld [vmem:[%s834_s19 + $0xf8] sm:$0xff] }
  0x24   : > { %583 = vst.msk [vmem:[%s865_s24 + $0x28] sm:$0xff] %vm577_vm4, %v454_v39  ;;  %v474_v37 = vmul.f32 %v867_v25, %v328_v26  ;;  %v332_v38 = vsub.f32 %v200_v30, %v839_v5  ;;  %v203_v39 = vld [vmem:[%s834_s19 + $0x100] sm:$0xff]  ;;  %v333_v41 = vsub.f32 %v201_v33, %v839_v5  ;;  %v334_v44 = vsub.f32 %v202_v36, %v839_v5 }
  0x25   : > { %584 = vst.msk [vmem:[%s865_s24 + $0x30] sm:$0xff] %vm577_vm4, %v455_v42  ;;  %v475_v40 = vmul.f32 %v867_v25, %v329_v29  ;;  %v204_v42 = vld [vmem:[%s834_s19 + $0x108] sm:$0xff]  ;;  %v476_v43 = vmul.f32 %v867_v25, %v330_v32  ;;  %v477_v46 = vmul.f32 %v867_v25, %v331_v35  ;;  %v335_v47 = vsub.f32 %v203_v39, %v839_v5 }
  0x26   : > { %585 = vst.msk [vmem:[%s865_s24 + $0x38] sm:$0xff] %vm577_vm4, %v456_v45  ;;  %v205_v45 = vld [vmem:[%s834_s19 + $0x110] sm:$0xff]  ;;  %v478_v49 = vmul.f32 %v867_v25, %v332_v38  ;;  %v336_v50 = vsub.f32 %v204_v42, %v839_v5  ;;  %v479_v52 = vmul.f32 %v867_v25, %v333_v41  ;;  %v480_v55 = vmul.f32 %v867_v25, %v334_v44 }
  0x27   : > { %586 = vst.msk [vmem:[%s865_s24 + $0x40] sm:$0xff] %vm577_vm4, %v457_v48  ;;  %v206_v48 = vld [vmem:[%s834_s19 + $0x118] sm:$0xff]  ;;  %v337_v53 = vsub.f32 %v205_v45, %v839_v5  ;;  %v481_v58 = vmul.f32 %v867_v25, %v335_v47 }
  0x28   : > { %587 = vst.msk [vmem:[%s865_s24 + $0x48] sm:$0xff] %vm577_vm4, %v458_v51  ;;  %v207_v51 = vld [vmem:[%s834_s19 + $0x120] sm:$0xff]  ;;  %v338_v56 = vsub.f32 %v206_v48, %v839_v5  ;;  %v482_v61 = vmul.f32 %v867_v25, %v336_v50 }
  0x29   : > { %588 = vst.msk [vmem:[%s865_s24 + $0x50] sm:$0xff] %vm577_vm4, %v459_v54  ;;  %v208_v54 = vld [vmem:[%s834_s19 + $0x128] sm:$0xff]  ;;  %v339_v59 = vsub.f32 %v207_v51, %v839_v5  ;;  %v483_v0 = vmul.f32 %v867_v25, %v337_v53 }
  0x2a   : > { %589 = vst.msk [vmem:[%s865_s24 + $0x58] sm:$0xff] %vm577_vm4, %v460_v57  ;;  %v209_v57 = vld [vmem:[%s834_s19 + $0x130] sm:$0xff]  ;;  %v340_v62 = vsub.f32 %v208_v54, %v839_v5  ;;  %v484_v3 = vmul.f32 %v867_v25, %v338_v56 }
  0x2b   : > { %590 = vst.msk [vmem:[%s865_s24 + $0x60] sm:$0xff] %vm577_vm4, %v461_v60  ;;  %v210_v60 = vld [vmem:[%s834_s19 + $0x138] sm:$0xff]  ;;  %v341_v1 = vsub.f32 %v209_v57, %v839_v5  ;;  %v485_v7 = vmul.f32 %v867_v25, %v339_v59 }
  0x2c   : > { %591 = vst.msk [vmem:[%s865_s24 + $0x68] sm:$0xff] %vm577_vm4, %v462_v63  ;;  %v211_v63 = vld [vmem:[%s834_s19 + $0x140] sm:$0xff]  ;;  %v342_v4 = vsub.f32 %v210_v60, %v839_v5  ;;  %v486_v10 = vmul.f32 %v867_v25, %v340_v62 }
  0x2d   : > { %592 = vst.msk [vmem:[%s865_s24 + $0x70] sm:$0xff] %vm577_vm4, %v463_v2  ;;  %v212_v2 = vld [vmem:[%s834_s19 + $0x148] sm:$0xff]  ;;  %v343_v8 = vsub.f32 %v211_v63, %v839_v5  ;;  %v487_v13 = vmul.f32 %v867_v25, %v341_v1 }
  0x2e   : > { %593 = vst.msk [vmem:[%s865_s24 + $0x78] sm:$0xff] %vm577_vm4, %v464_v6  ;;  %v213_v6 = vld [vmem:[%s834_s19 + $0x150] sm:$0xff]  ;;  %v344_v11 = vsub.f32 %v212_v2, %v839_v5  ;;  %v488_v16 = vmul.f32 %v867_v25, %v342_v4 }
  0x2f   : > { %594 = vst.msk [vmem:[%s865_s24 + $0x80] sm:$0xff] %vm577_vm4, %v465_v9  ;;  %v214_v9 = vld [vmem:[%s834_s19 + $0x158] sm:$0xff]  ;;  %v345_v14 = vsub.f32 %v213_v6, %v839_v5  ;;  %v489_v19 = vmul.f32 %v867_v25, %v343_v8 }
  0x30   : > { %595 = vst.msk [vmem:[%s865_s24 + $0x88] sm:$0xff] %vm577_vm4, %v466_v12  ;;  %v215_v12 = vld [vmem:[%s834_s19 + $0x160] sm:$0xff]  ;;  %v346_v17 = vsub.f32 %v214_v9, %v839_v5  ;;  %v490_v22 = vmul.f32 %v867_v25, %v344_v11 }
  0x31   : > { %596 = vst.msk [vmem:[%s865_s24 + $0x90] sm:$0xff] %vm577_vm4, %v467_v15  ;;  %v216_v15 = vld [vmem:[%s834_s19 + $0x168] sm:$0xff]  ;;  %v347_v20 = vsub.f32 %v215_v12, %v839_v5  ;;  %v491_v26 = vmul.f32 %v867_v25, %v345_v14 }
  0x32   : > { %597 = vst.msk [vmem:[%s865_s24 + $0x98] sm:$0xff] %vm577_vm4, %v468_v18  ;;  %v217_v18 = vld [vmem:[%s834_s19 + $0x170] sm:$0xff]  ;;  %v348_v23 = vsub.f32 %v216_v15, %v839_v5  ;;  %v492_v29 = vmul.f32 %v867_v25, %v346_v17 }
  0x33   : > { %598 = vst.msk [vmem:[%s865_s24 + $0xa0] sm:$0xff] %vm577_vm4, %v469_v21  ;;  %v218_v21 = vld [vmem:[%s834_s19 + $0x178] sm:$0xff]  ;;  %v349_v27 = vsub.f32 %v217_v18, %v839_v5  ;;  %v493_v32 = vmul.f32 %v867_v25, %v347_v20 }
  0x34   : > { %599 = vst.msk [vmem:[%s865_s24 + $0xa8] sm:$0xff] %vm577_vm4, %v470_v24  ;;  %v219_v24 = vld [vmem:[%s834_s19 + $0x180] sm:$0xff]  ;;  %v350_v30 = vsub.f32 %v218_v21, %v839_v5  ;;  %v494_v35 = vmul.f32 %v867_v25, %v348_v23 }
  0x35   : > { %600 = vst.msk [vmem:[%s865_s24 + $0xb0] sm:$0xff] %vm577_vm4, %v471_v28  ;;  %v220_v28 = vld [vmem:[%s834_s19 + $0x188] sm:$0xff]  ;;  %v351_v33 = vsub.f32 %v219_v24, %v839_v5  ;;  %v495_v38 = vmul.f32 %v867_v25, %v349_v27 }
  0x36   : > { %601 = vst.msk [vmem:[%s865_s24 + $0xb8] sm:$0xff] %vm577_vm4, %v472_v31  ;;  %v221_v31 = vld [vmem:[%s834_s19 + $0x190] sm:$0xff]  ;;  %v352_v36 = vsub.f32 %v220_v28, %v839_v5  ;;  %v496_v41 = vmul.f32 %v867_v25, %v350_v30 }
  0x37   : > { %602 = vst.msk [vmem:[%s865_s24 + $0xc0] sm:$0xff] %vm577_vm4, %v473_v34  ;;  %v222_v34 = vld [vmem:[%s834_s19 + $0x198] sm:$0xff]  ;;  %v353_v39 = vsub.f32 %v221_v31, %v839_v5  ;;  %v497_v44 = vmul.f32 %v867_v25, %v351_v33 }
  0x38   : > { %603 = vst.msk [vmem:[%s865_s24 + $0xc8] sm:$0xff] %vm577_vm4, %v474_v37  ;;  %v223_v37 = vld [vmem:[%s834_s19 + $0x1a0] sm:$0xff]  ;;  %v354_v42 = vsub.f32 %v222_v34, %v839_v5  ;;  %v498_v47 = vmul.f32 %v867_v25, %v352_v36 }
  0x39   : > { %604 = vst.msk [vmem:[%s865_s24 + $0xd0] sm:$0xff] %vm577_vm4, %v475_v40  ;;  %v224_v40 = vld [vmem:[%s834_s19 + $0x1a8] sm:$0xff]  ;;  %v355_v45 = vsub.f32 %v223_v37, %v839_v5  ;;  %v499_v50 = vmul.f32 %v867_v25, %v353_v39 }
  0x3a   : > { %605 = vst.msk [vmem:[%s865_s24 + $0xd8] sm:$0xff] %vm577_vm4, %v476_v43  ;;  %v225_v43 = vld [vmem:[%s834_s19 + $0x1b0] sm:$0xff]  ;;  %v356_v48 = vsub.f32 %v224_v40, %v839_v5  ;;  %v500_v53 = vmul.f32 %v867_v25, %v354_v42 }
  0x3b   : > { %606 = vst.msk [vmem:[%s865_s24 + $0xe0] sm:$0xff] %vm577_vm4, %v477_v46  ;;  %v226_v46 = vld [vmem:[%s834_s19 + $0x1b8] sm:$0xff]  ;;  %v357_v51 = vsub.f32 %v225_v43, %v839_v5  ;;  %v501_v56 = vmul.f32 %v867_v25, %v355_v45 }
  0x3c   : > { %607 = vst.msk [vmem:[%s865_s24 + $0xe8] sm:$0xff] %vm577_vm4, %v478_v49  ;;  %v227_v49 = vld [vmem:[%s834_s19 + $0x1c0] sm:$0xff]  ;;  %v358_v54 = vsub.f32 %v226_v46, %v839_v5  ;;  %v502_v59 = vmul.f32 %v867_v25, %v356_v48 }
  0x3d   : > { %608 = vst.msk [vmem:[%s865_s24 + $0xf0] sm:$0xff] %vm577_vm4, %v479_v52  ;;  %v228_v52 = vld [vmem:[%s834_s19 + $0x1c8] sm:$0xff]  ;;  %v359_v57 = vsub.f32 %v227_v49, %v839_v5  ;;  %v503_v62 = vmul.f32 %v867_v25, %v357_v51 }
  0x3e   : > { %609 = vst.msk [vmem:[%s865_s24 + $0xf8] sm:$0xff] %vm577_vm4, %v480_v55  ;;  %v229_v55 = vld [vmem:[%s834_s19 + $0x1d0] sm:$0xff]  ;;  %v360_v60 = vsub.f32 %v228_v52, %v839_v5  ;;  %v504_v1 = vmul.f32 %v867_v25, %v358_v54 }
  0x3f   : > { %610 = vst.msk [vmem:[%s865_s24 + $0x100] sm:$0xff] %vm577_vm4, %v481_v58  ;;  %v230_v58 = vld [vmem:[%s834_s19 + $0x1d8] sm:$0xff]  ;;  %v361_v63 = vsub.f32 %v229_v55, %v839_v5  ;;  %v505_v4 = vmul.f32 %v867_v25, %v359_v57 }
  0x40   : > { %611 = vst.msk [vmem:[%s865_s24 + $0x108] sm:$0xff] %vm577_vm4, %v482_v61  ;;  %v231_v61 = vld [vmem:[%s834_s19 + $0x1e0] sm:$0xff]  ;;  %v362_v2 = vsub.f32 %v230_v58, %v839_v5  ;;  %v506_v8 = vmul.f32 %v867_v25, %v360_v60 }
  0x41   : > { %612 = vst.msk [vmem:[%s865_s24 + $0x110] sm:$0xff] %vm577_vm4, %v483_v0  ;;  %v232_v0 = vld [vmem:[%s834_s19 + $0x1e8] sm:$0xff]  ;;  %v363_v6 = vsub.f32 %v231_v61, %v839_v5  ;;  %v507_v11 = vmul.f32 %v867_v25, %v361_v63 }
  0x42   : > { %613 = vst.msk [vmem:[%s865_s24 + $0x118] sm:$0xff] %vm577_vm4, %v484_v3  ;;  %v233_v3 = vld [vmem:[%s834_s19 + $0x1f0] sm:$0xff]  ;;  %v364_v9 = vsub.f32 %v232_v0, %v839_v5  ;;  %v508_v14 = vmul.f32 %v867_v25, %v362_v2 }
  0x43   : > { %614 = vst.msk [vmem:[%s865_s24 + $0x120] sm:$0xff] %vm577_vm4, %v485_v7  ;;  %v234_v7 = vld [vmem:[%s834_s19 + $0x1f8] sm:$0xff]  ;;  %v365_v12 = vsub.f32 %v233_v3, %v839_v5  ;;  %v509_v17 = vmul.f32 %v867_v25, %v363_v6 }
  0x44   : > { %615 = vst.msk [vmem:[%s865_s24 + $0x128] sm:$0xff] %vm577_vm4, %v486_v10  ;;  %v235_v10 = vld [vmem:[%s834_s19 + $0x200] sm:$0xff]  ;;  %v366_v15 = vsub.f32 %v234_v7, %v839_v5  ;;  %v510_v20 = vmul.f32 %v867_v25, %v364_v9 }
  0x45   : > { %616 = vst.msk [vmem:[%s865_s24 + $0x130] sm:$0xff] %vm577_vm4, %v487_v13  ;;  %v236_v13 = vld [vmem:[%s834_s19 + $0x208] sm:$0xff]  ;;  %v367_v18 = vsub.f32 %v235_v10, %v839_v5  ;;  %v511_v23 = vmul.f32 %v867_v25, %v365_v12 }
  0x46   : > { %617 = vst.msk [vmem:[%s865_s24 + $0x138] sm:$0xff] %vm577_vm4, %v488_v16  ;;  %v237_v16 = vld [vmem:[%s834_s19 + $0x210] sm:$0xff]  ;;  %v368_v21 = vsub.f32 %v236_v13, %v839_v5  ;;  %v512_v27 = vmul.f32 %v867_v25, %v366_v15 }
  0x47   : > { %618 = vst.msk [vmem:[%s865_s24 + $0x140] sm:$0xff] %vm577_vm4, %v489_v19  ;;  %v238_v19 = vld [vmem:[%s834_s19 + $0x218] sm:$0xff]  ;;  %v369_v24 = vsub.f32 %v237_v16, %v839_v5  ;;  %v513_v30 = vmul.f32 %v867_v25, %v367_v18 }
  0x48   : > { %619 = vst.msk [vmem:[%s865_s24 + $0x148] sm:$0xff] %vm577_vm4, %v490_v22  ;;  %v239_v22 = vld [vmem:[%s834_s19 + $0x220] sm:$0xff]  ;;  %v370_v28 = vsub.f32 %v238_v19, %v839_v5  ;;  %v514_v33 = vmul.f32 %v867_v25, %v368_v21 }
  0x49   : > { %620 = vst.msk [vmem:[%s865_s24 + $0x150] sm:$0xff] %vm577_vm4, %v491_v26  ;;  %v240_v26 = vld [vmem:[%s834_s19 + $0x228] sm:$0xff]  ;;  %v371_v31 = vsub.f32 %v239_v22, %v839_v5  ;;  %v515_v36 = vmul.f32 %v867_v25, %v369_v24 }
  0x4a   : > { %621 = vst.msk [vmem:[%s865_s24 + $0x158] sm:$0xff] %vm577_vm4, %v492_v29  ;;  %v241_v29 = vld [vmem:[%s834_s19 + $0x230] sm:$0xff]  ;;  %v372_v34 = vsub.f32 %v240_v26, %v839_v5  ;;  %v516_v39 = vmul.f32 %v867_v25, %v370_v28 }
  0x4b   : > { %622 = vst.msk [vmem:[%s865_s24 + $0x160] sm:$0xff] %vm577_vm4, %v493_v32  ;;  %v242_v32 = vld [vmem:[%s834_s19 + $0x238] sm:$0xff]  ;;  %v373_v37 = vsub.f32 %v241_v29, %v839_v5  ;;  %v517_v42 = vmul.f32 %v867_v25, %v371_v31 }
  0x4c   : > { %623 = vst.msk [vmem:[%s865_s24 + $0x168] sm:$0xff] %vm577_vm4, %v494_v35  ;;  %v243_v35 = vld [vmem:[%s834_s19 + $0x240] sm:$0xff]  ;;  %v374_v40 = vsub.f32 %v242_v32, %v839_v5  ;;  %v518_v45 = vmul.f32 %v867_v25, %v372_v34 }
  0x4d   : > { %624 = vst.msk [vmem:[%s865_s24 + $0x170] sm:$0xff] %vm577_vm4, %v495_v38  ;;  %v244_v38 = vld [vmem:[%s834_s19 + $0x248] sm:$0xff]  ;;  %v375_v43 = vsub.f32 %v243_v35, %v839_v5  ;;  %v519_v48 = vmul.f32 %v867_v25, %v373_v37 }
  0x4e   : > { %625 = vst.msk [vmem:[%s865_s24 + $0x178] sm:$0xff] %vm577_vm4, %v496_v41  ;;  %v245_v41 = vld [vmem:[%s834_s19 + $0x250] sm:$0xff]  ;;  %v376_v46 = vsub.f32 %v244_v38, %v839_v5  ;;  %v520_v51 = vmul.f32 %v867_v25, %v374_v40 }
  0x4f   : > { %626 = vst.msk [vmem:[%s865_s24 + $0x180] sm:$0xff] %vm577_vm4, %v497_v44  ;;  %v246_v44 = vld [vmem:[%s834_s19 + $0x258] sm:$0xff]  ;;  %v377_v49 = vsub.f32 %v245_v41, %v839_v5  ;;  %v521_v54 = vmul.f32 %v867_v25, %v375_v43 }
  0x50   : > { %627 = vst.msk [vmem:[%s865_s24 + $0x188] sm:$0xff] %vm577_vm4, %v498_v47  ;;  %v247_v47 = vld [vmem:[%s834_s19 + $0x260] sm:$0xff]  ;;  %v378_v52 = vsub.f32 %v246_v44, %v839_v5  ;;  %v522_v57 = vmul.f32 %v867_v25, %v376_v46 }
  0x51   : > { %628 = vst.msk [vmem:[%s865_s24 + $0x190] sm:$0xff] %vm577_vm4, %v499_v50  ;;  %v248_v50 = vld [vmem:[%s834_s19 + $0x268] sm:$0xff]  ;;  %v379_v55 = vsub.f32 %v247_v47, %v839_v5  ;;  %v523_v60 = vmul.f32 %v867_v25, %v377_v49 }
  0x52   : > { %629 = vst.msk [vmem:[%s865_s24 + $0x198] sm:$0xff] %vm577_vm4, %v500_v53  ;;  %v249_v53 = vld [vmem:[%s834_s19 + $0x270] sm:$0xff]  ;;  %v380_v58 = vsub.f32 %v248_v50, %v839_v5  ;;  %v524_v63 = vmul.f32 %v867_v25, %v378_v52 }
  0x53   : > { %630 = vst.msk [vmem:[%s865_s24 + $0x1a0] sm:$0xff] %vm577_vm4, %v501_v56  ;;  %v250_v56 = vld [vmem:[%s834_s19 + $0x278] sm:$0xff]  ;;  %v381_v61 = vsub.f32 %v249_v53, %v839_v5  ;;  %v525_v2 = vmul.f32 %v867_v25, %v379_v55 }
  0x54   : > { %631 = vst.msk [vmem:[%s865_s24 + $0x1a8] sm:$0xff] %vm577_vm4, %v502_v59  ;;  %v251_v59 = vld [vmem:[%s834_s19 + $0x280] sm:$0xff]  ;;  %v382_v0 = vsub.f32 %v250_v56, %v839_v5  ;;  %v526_v6 = vmul.f32 %v867_v25, %v380_v58 }
  0x55   : > { %632 = vst.msk [vmem:[%s865_s24 + $0x1b0] sm:$0xff] %vm577_vm4, %v503_v62  ;;  %v252_v62 = vld [vmem:[%s834_s19 + $0x288] sm:$0xff]  ;;  %v383_v3 = vsub.f32 %v251_v59, %v839_v5  ;;  %v527_v9 = vmul.f32 %v867_v25, %v381_v61 }
  0x56   : > { %633 = vst.msk [vmem:[%s865_s24 + $0x1b8] sm:$0xff] %vm577_vm4, %v504_v1  ;;  %v253_v1 = vld [vmem:[%s834_s19 + $0x290] sm:$0xff]  ;;  %v384_v7 = vsub.f32 %v252_v62, %v839_v5  ;;  %v528_v12 = vmul.f32 %v867_v25, %v382_v0 }
  0x57   : > { %634 = vst.msk [vmem:[%s865_s24 + $0x1c0] sm:$0xff] %vm577_vm4, %v505_v4  ;;  %v254_v4 = vld [vmem:[%s834_s19 + $0x298] sm:$0xff]  ;;  %v385_v10 = vsub.f32 %v253_v1, %v839_v5  ;;  %v529_v15 = vmul.f32 %v867_v25, %v383_v3 }
  0x58   : > { %635 = vst.msk [vmem:[%s865_s24 + $0x1c8] sm:$0xff] %vm577_vm4, %v506_v8  ;;  %v255_v8 = vld [vmem:[%s834_s19 + $0x2a0] sm:$0xff]  ;;  %v386_v13 = vsub.f32 %v254_v4, %v839_v5  ;;  %v530_v18 = vmul.f32 %v867_v25, %v384_v7 }
  0x59   : > { %636 = vst.msk [vmem:[%s865_s24 + $0x1d0] sm:$0xff] %vm577_vm4, %v507_v11  ;;  %v256_v11 = vld [vmem:[%s834_s19 + $0x2a8] sm:$0xff]  ;;  %v387_v16 = vsub.f32 %v255_v8, %v839_v5  ;;  %v531_v21 = vmul.f32 %v867_v25, %v385_v10 }
  0x5a   : > { %637 = vst.msk [vmem:[%s865_s24 + $0x1d8] sm:$0xff] %vm577_vm4, %v508_v14  ;;  %v257_v14 = vld [vmem:[%s834_s19 + $0x2b0] sm:$0xff]  ;;  %v388_v19 = vsub.f32 %v256_v11, %v839_v5  ;;  %v532_v24 = vmul.f32 %v867_v25, %v386_v13 }
  0x5b   : > { %638 = vst.msk [vmem:[%s865_s24 + $0x1e0] sm:$0xff] %vm577_vm4, %v509_v17  ;;  %v258_v17 = vld [vmem:[%s834_s19 + $0x2b8] sm:$0xff]  ;;  %v389_v22 = vsub.f32 %v257_v14, %v839_v5  ;;  %v533_v28 = vmul.f32 %v867_v25, %v387_v16 }
  0x5c   : > { %639 = vst.msk [vmem:[%s865_s24 + $0x1e8] sm:$0xff] %vm577_vm4, %v510_v20  ;;  %v259_v20 = vld [vmem:[%s834_s19 + $0x2c0] sm:$0xff]  ;;  %v390_v26 = vsub.f32 %v258_v17, %v839_v5  ;;  %v534_v31 = vmul.f32 %v867_v25, %v388_v19 }
  0x5d   : > { %640 = vst.msk [vmem:[%s865_s24 + $0x1f0] sm:$0xff] %vm577_vm4, %v511_v23  ;;  %v260_v23 = vld [vmem:[%s834_s19 + $0x2c8] sm:$0xff]  ;;  %v391_v29 = vsub.f32 %v259_v20, %v839_v5  ;;  %v535_v34 = vmul.f32 %v867_v25, %v389_v22 }
  0x5e   : > { %641 = vst.msk [vmem:[%s865_s24 + $0x1f8] sm:$0xff] %vm577_vm4, %v512_v27  ;;  %v261_v27 = vld [vmem:[%s834_s19 + $0x2d0] sm:$0xff]  ;;  %v392_v32 = vsub.f32 %v260_v23, %v839_v5  ;;  %v536_v37 = vmul.f32 %v867_v25, %v390_v26 }
  0x5f   : > { %642 = vst.msk [vmem:[%s865_s24 + $0x200] sm:$0xff] %vm577_vm4, %v513_v30  ;;  %v262_v30 = vld [vmem:[%s834_s19 + $0x2d8] sm:$0xff]  ;;  %v393_v35 = vsub.f32 %v261_v27, %v839_v5  ;;  %v537_v40 = vmul.f32 %v867_v25, %v391_v29 }
  0x60   : > { %643 = vst.msk [vmem:[%s865_s24 + $0x208] sm:$0xff] %vm577_vm4, %v514_v33  ;;  %v263_v33 = vld [vmem:[%s834_s19 + $0x2e0] sm:$0xff]  ;;  %v394_v38 = vsub.f32 %v262_v30, %v839_v5  ;;  %v538_v43 = vmul.f32 %v867_v25, %v392_v32 }
  0x61   : > { %644 = vst.msk [vmem:[%s865_s24 + $0x210] sm:$0xff] %vm577_vm4, %v515_v36  ;;  %v264_v36 = vld [vmem:[%s834_s19 + $0x2e8] sm:$0xff]  ;;  %v395_v41 = vsub.f32 %v263_v33, %v839_v5  ;;  %v539_v46 = vmul.f32 %v867_v25, %v393_v35 }
  0x62   : > { %645 = vst.msk [vmem:[%s865_s24 + $0x218] sm:$0xff] %vm577_vm4, %v516_v39  ;;  %v265_v39 = vld [vmem:[%s834_s19 + $0x2f0] sm:$0xff]  ;;  %v396_v44 = vsub.f32 %v264_v36, %v839_v5  ;;  %v540_v49 = vmul.f32 %v867_v25, %v394_v38 }
  0x63   : > { %646 = vst.msk [vmem:[%s865_s24 + $0x220] sm:$0xff] %vm577_vm4, %v517_v42  ;;  %v266_v42 = vld [vmem:[%s834_s19 + $0x2f8] sm:$0xff]  ;;  %v397_v47 = vsub.f32 %v265_v39, %v839_v5  ;;  %v541_v52 = vmul.f32 %v867_v25, %v395_v41 }
  0x64   : > { %647 = vst.msk [vmem:[%s865_s24 + $0x228] sm:$0xff] %vm577_vm4, %v518_v45  ;;  %v267_v45 = vld [vmem:[%s834_s19 + $0x300] sm:$0xff]  ;;  %v398_v50 = vsub.f32 %v266_v42, %v839_v5  ;;  %v542_v55 = vmul.f32 %v867_v25, %v396_v44 }
  0x65   : > { %648 = vst.msk [vmem:[%s865_s24 + $0x230] sm:$0xff] %vm577_vm4, %v519_v48  ;;  %v268_v48 = vld [vmem:[%s834_s19 + $0x308] sm:$0xff]  ;;  %v399_v53 = vsub.f32 %v267_v45, %v839_v5  ;;  %v543_v58 = vmul.f32 %v867_v25, %v397_v47 }
  0x66   : > { %649 = vst.msk [vmem:[%s865_s24 + $0x238] sm:$0xff] %vm577_vm4, %v520_v51  ;;  %v269_v51 = vld [vmem:[%s834_s19 + $0x310] sm:$0xff]  ;;  %v400_v56 = vsub.f32 %v268_v48, %v839_v5  ;;  %v544_v61 = vmul.f32 %v867_v25, %v398_v50 }
  0x67   : > { %650 = vst.msk [vmem:[%s865_s24 + $0x240] sm:$0xff] %vm577_vm4, %v521_v54  ;;  %v270_v54 = vld [vmem:[%s834_s19 + $0x318] sm:$0xff]  ;;  %v401_v59 = vsub.f32 %v269_v51, %v839_v5  ;;  %v545_v0 = vmul.f32 %v867_v25, %v399_v53 }
  0x68   : > { %651 = vst.msk [vmem:[%s865_s24 + $0x248] sm:$0xff] %vm577_vm4, %v522_v57  ;;  %v271_v57 = vld [vmem:[%s834_s19 + $0x320] sm:$0xff]  ;;  %v402_v62 = vsub.f32 %v270_v54, %v839_v5  ;;  %v546_v3 = vmul.f32 %v867_v25, %v400_v56 }
  0x69   : > { %652 = vst.msk [vmem:[%s865_s24 + $0x250] sm:$0xff] %vm577_vm4, %v523_v60  ;;  %v272_v60 = vld [vmem:[%s834_s19 + $0x328] sm:$0xff]  ;;  %v403_v1 = vsub.f32 %v271_v57, %v839_v5  ;;  %v547_v7 = vmul.f32 %v867_v25, %v401_v59 }
  0x6a   : > { %653 = vst.msk [vmem:[%s865_s24 + $0x258] sm:$0xff] %vm577_vm4, %v524_v63  ;;  %v273_v63 = vld [vmem:[%s834_s19 + $0x330] sm:$0xff]  ;;  %v404_v4 = vsub.f32 %v272_v60, %v839_v5  ;;  %v548_v10 = vmul.f32 %v867_v25, %v402_v62 }
  0x6b   : > { %654 = vst.msk [vmem:[%s865_s24 + $0x260] sm:$0xff] %vm577_vm4, %v525_v2  ;;  %v274_v2 = vld [vmem:[%s834_s19 + $0x338] sm:$0xff]  ;;  %v405_v8 = vsub.f32 %v273_v63, %v839_v5  ;;  %v549_v13 = vmul.f32 %v867_v25, %v403_v1 }
  0x6c   : > { %655 = vst.msk [vmem:[%s865_s24 + $0x268] sm:$0xff] %vm577_vm4, %v526_v6  ;;  %v275_v6 = vld [vmem:[%s834_s19 + $0x340] sm:$0xff]  ;;  %v406_v11 = vsub.f32 %v274_v2, %v839_v5  ;;  %v550_v16 = vmul.f32 %v867_v25, %v404_v4 }
  0x6d   : > { %656 = vst.msk [vmem:[%s865_s24 + $0x270] sm:$0xff] %vm577_vm4, %v527_v9  ;;  %v276_v9 = vld [vmem:[%s834_s19 + $0x348] sm:$0xff]  ;;  %v407_v14 = vsub.f32 %v275_v6, %v839_v5  ;;  %v551_v19 = vmul.f32 %v867_v25, %v405_v8 }
  0x6e   : > { %657 = vst.msk [vmem:[%s865_s24 + $0x278] sm:$0xff] %vm577_vm4, %v528_v12  ;;  %v277_v12 = vld [vmem:[%s834_s19 + $0x350] sm:$0xff]  ;;  %v408_v17 = vsub.f32 %v276_v9, %v839_v5  ;;  %v552_v22 = vmul.f32 %v867_v25, %v406_v11 }
  0x6f   : > { %658 = vst.msk [vmem:[%s865_s24 + $0x280] sm:$0xff] %vm577_vm4, %v529_v15  ;;  %v278_v15 = vld [vmem:[%s834_s19 + $0x358] sm:$0xff]  ;;  %v409_v20 = vsub.f32 %v277_v12, %v839_v5  ;;  %v553_v26 = vmul.f32 %v867_v25, %v407_v14 }
  0x70   : > { %659 = vst.msk [vmem:[%s865_s24 + $0x288] sm:$0xff] %vm577_vm4, %v530_v18  ;;  %v279_v18 = vld [vmem:[%s834_s19 + $0x360] sm:$0xff]  ;;  %v410_v23 = vsub.f32 %v278_v15, %v839_v5  ;;  %v554_v29 = vmul.f32 %v867_v25, %v408_v17 }
  0x71   : > { %660 = vst.msk [vmem:[%s865_s24 + $0x290] sm:$0xff] %vm577_vm4, %v531_v21  ;;  %v280_v21 = vld [vmem:[%s834_s19 + $0x368] sm:$0xff]  ;;  %v411_v27 = vsub.f32 %v279_v18, %v839_v5  ;;  %v555_v32 = vmul.f32 %v867_v25, %v409_v20 }
  0x72   : > { %661 = vst.msk [vmem:[%s865_s24 + $0x298] sm:$0xff] %vm577_vm4, %v532_v24  ;;  %v281_v24 = vld [vmem:[%s834_s19 + $0x370] sm:$0xff]  ;;  %v412_v30 = vsub.f32 %v280_v21, %v839_v5  ;;  %v556_v35 = vmul.f32 %v867_v25, %v410_v23 }
  0x73   : > { %662 = vst.msk [vmem:[%s865_s24 + $0x2a0] sm:$0xff] %vm577_vm4, %v533_v28  ;;  %v282_v28 = vld [vmem:[%s834_s19 + $0x378] sm:$0xff]  ;;  %v413_v33 = vsub.f32 %v281_v24, %v839_v5  ;;  %v557_v38 = vmul.f32 %v867_v25, %v411_v27 }
  0x74   : > { %663 = vst.msk [vmem:[%s865_s24 + $0x2a8] sm:$0xff] %vm577_vm4, %v534_v31  ;;  %v283_v31 = vld [vmem:[%s834_s19 + $0x380] sm:$0xff]  ;;  %v414_v36 = vsub.f32 %v282_v28, %v839_v5  ;;  %v558_v41 = vmul.f32 %v867_v25, %v412_v30 }
  0x75   : > { %664 = vst.msk [vmem:[%s865_s24 + $0x2b0] sm:$0xff] %vm577_vm4, %v535_v34  ;;  %v284_v34 = vld [vmem:[%s834_s19 + $0x388] sm:$0xff]  ;;  %v415_v39 = vsub.f32 %v283_v31, %v839_v5  ;;  %v559_v44 = vmul.f32 %v867_v25, %v413_v33 }
  0x76   : > { %665 = vst.msk [vmem:[%s865_s24 + $0x2b8] sm:$0xff] %vm577_vm4, %v536_v37  ;;  %v285_v37 = vld [vmem:[%s834_s19 + $0x390] sm:$0xff]  ;;  %v416_v42 = vsub.f32 %v284_v34, %v839_v5  ;;  %v560_v47 = vmul.f32 %v867_v25, %v414_v36 }
  0x77   : > { %666 = vst.msk [vmem:[%s865_s24 + $0x2c0] sm:$0xff] %vm577_vm4, %v537_v40  ;;  %v286_v40 = vld [vmem:[%s834_s19 + $0x398] sm:$0xff]  ;;  %v417_v45 = vsub.f32 %v285_v37, %v839_v5  ;;  %v561_v50 = vmul.f32 %v867_v25, %v415_v39 }
  0x78   : > { %667 = vst.msk [vmem:[%s865_s24 + $0x2c8] sm:$0xff] %vm577_vm4, %v538_v43  ;;  %v287_v43 = vld [vmem:[%s834_s19 + $0x3a0] sm:$0xff]  ;;  %v418_v48 = vsub.f32 %v286_v40, %v839_v5  ;;  %v562_v53 = vmul.f32 %v867_v25, %v416_v42 }
  0x79   : > { %668 = vst.msk [vmem:[%s865_s24 + $0x2d0] sm:$0xff] %vm577_vm4, %v539_v46  ;;  %v288_v46 = vld [vmem:[%s834_s19 + $0x3a8] sm:$0xff]  ;;  %v419_v51 = vsub.f32 %v287_v43, %v839_v5  ;;  %v563_v56 = vmul.f32 %v867_v25, %v417_v45 }
  0x7a   : > { %669 = vst.msk [vmem:[%s865_s24 + $0x2d8] sm:$0xff] %vm577_vm4, %v540_v49  ;;  %v289_v49 = vld [vmem:[%s834_s19 + $0x3b0] sm:$0xff]  ;;  %v420_v54 = vsub.f32 %v288_v46, %v839_v5  ;;  %v564_v59 = vmul.f32 %v867_v25, %v418_v48 }
  0x7b   : > { %670 = vst.msk [vmem:[%s865_s24 + $0x2e0] sm:$0xff] %vm577_vm4, %v541_v52  ;;  %v290_v52 = vld [vmem:[%s834_s19 + $0x3b8] sm:$0xff]  ;;  %v421_v57 = vsub.f32 %v289_v49, %v839_v5  ;;  %v565_v62 = vmul.f32 %v867_v25, %v419_v51 }
  0x7c   : > { %671 = vst.msk [vmem:[%s865_s24 + $0x2e8] sm:$0xff] %vm577_vm4, %v542_v55  ;;  %v291_v55 = vld [vmem:[%s834_s19 + $0x3c0] sm:$0xff]  ;;  %v422_v60 = vsub.f32 %v290_v52, %v839_v5  ;;  %v566_v1 = vmul.f32 %v867_v25, %v420_v54 }
  0x7d   : > { %672 = vst.msk [vmem:[%s865_s24 + $0x2f0] sm:$0xff] %vm577_vm4, %v543_v58  ;;  %v292_v58 = vld [vmem:[%s834_s19 + $0x3c8] sm:$0xff]  ;;  %v423_v63 = vsub.f32 %v291_v55, %v839_v5  ;;  %v567_v4 = vmul.f32 %v867_v25, %v421_v57 }
  0x7e   : > { %673 = vst.msk [vmem:[%s865_s24 + $0x2f8] sm:$0xff] %vm577_vm4, %v544_v61  ;;  %v293_v61 = vld [vmem:[%s834_s19 + $0x3d0] sm:$0xff]  ;;  %v424_v2 = vsub.f32 %v292_v58, %v839_v5  ;;  %v568_v8 = vmul.f32 %v867_v25, %v422_v60 }
  0x7f   : > { %674 = vst.msk [vmem:[%s865_s24 + $0x300] sm:$0xff] %vm577_vm4, %v545_v0  ;;  %v294_v0 = vld [vmem:[%s834_s19 + $0x3d8] sm:$0xff]  ;;  %v425_v6 = vsub.f32 %v293_v61, %v839_v5  ;;  %v569_v11 = vmul.f32 %v867_v25, %v423_v63 }
  0x80   : > { %675 = vst.msk [vmem:[%s865_s24 + $0x308] sm:$0xff] %vm577_vm4, %v546_v3  ;;  %v295_v3 = vld [vmem:[%s834_s19 + $0x3e0] sm:$0xff]  ;;  %v426_v9 = vsub.f32 %v294_v0, %v839_v5  ;;  %v570_v14 = vmul.f32 %v867_v25, %v424_v2 }
  0x81   : > { %676 = vst.msk [vmem:[%s865_s24 + $0x310] sm:$0xff] %vm577_vm4, %v547_v7  ;;  %v296_v7 = vld [vmem:[%s834_s19 + $0x3e8] sm:$0xff]  ;;  %v427_v12 = vsub.f32 %v295_v3, %v839_v5 }
  0x82   : > { %677 = vst.msk [vmem:[%s865_s24 + $0x318] sm:$0xff] %vm577_vm4, %v548_v10  ;;  %v297_v10 = vld [vmem:[%s834_s19 + $0x3f0] sm:$0xff]  ;;  %v428_v15 = vsub.f32 %v296_v7, %v839_v5  ;;  %v572_v18 = vmul.f32 %v867_v25, %v426_v9 }
  0x83   : > { %678 = vst.msk [vmem:[%s865_s24 + $0x320] sm:$0xff] %vm577_vm4, %v549_v13  ;;  %v298_v13 = vld [vmem:[%s834_s19 + $0x3f8] sm:$0xff]  ;;  %v429_v17 = vsub.f32 %v297_v10, %v839_v5  ;;  %v573_v21 = vmul.f32 %v867_v25, %v427_v12 }
  0x84   : > { %679 = vst.msk [vmem:[%s865_s24 + $0x328] sm:$0xff] %vm577_vm4, %v550_v16  ;;  %v571_v16 = vmul.f32 %v867_v25, %v425_v6 }
  0x85   : > { %680 = vst.msk [vmem:[%s865_s24 + $0x330] sm:$0xff] %vm577_vm4, %v551_v19  ;;  %v786_v19 = vld [vmem:[%s1502_s1] ss:$0 sm:$0xff]  ;;  %v575_v5 = vmul.f32 %v867_v25, %v429_v17 }
  0x86   : > { %681 = vst.msk [vmem:[%s865_s24 + $0x338] sm:$0xff] %vm577_vm4, %v552_v22  ;;  %v430_v20 = vsub.f32 %v298_v13, %v786_v19  ;;  %v574_v22 = vmul.f32 %v867_v25, %v428_v15 }
  0x87   : > { %682 = vst.msk [vmem:[%s865_s24 + $0x340] sm:$0xff] %vm577_vm4, %v553_v26 }
  0x88   : > { %683 = vst.msk [vmem:[%s865_s24 + $0x348] sm:$0xff] %vm577_vm4, %v554_v29  ;;  %v576_v23 = vmul.f32 %v867_v25, %v430_v20 }
  0x89   : > { %684 = vst.msk [vmem:[%s865_s24 + $0x350] sm:$0xff] %vm577_vm4, %v555_v32 }
  0x8a   : > { %685 = vst.msk [vmem:[%s865_s24 + $0x358] sm:$0xff] %vm577_vm4, %v556_v35 }
  0x8b   : > { %686 = vst.msk [vmem:[%s865_s24 + $0x360] sm:$0xff] %vm577_vm4, %v557_v38 }
  0x8c   : > { %687 = vst.msk [vmem:[%s865_s24 + $0x368] sm:$0xff] %vm577_vm4, %v558_v41 }
  0x8d   : > { %688 = vst.msk [vmem:[%s865_s24 + $0x370] sm:$0xff] %vm577_vm4, %v559_v44 }
  0x8e   : > { %689 = vst.msk [vmem:[%s865_s24 + $0x378] sm:$0xff] %vm577_vm4, %v560_v47 }
  0x8f   : > { %690 = vst.msk [vmem:[%s865_s24 + $0x380] sm:$0xff] %vm577_vm4, %v561_v50 }
  0x90   : > { %691 = vst.msk [vmem:[%s865_s24 + $0x388] sm:$0xff] %vm577_vm4, %v562_v53 }
  0x91   : > { %692 = vst.msk [vmem:[%s865_s24 + $0x390] sm:$0xff] %vm577_vm4, %v563_v56 }
  0x92   : > { %693 = vst.msk [vmem:[%s865_s24 + $0x398] sm:$0xff] %vm577_vm4, %v564_v59 }
  0x93   : > { %694 = vst.msk [vmem:[%s865_s24 + $0x3a0] sm:$0xff] %vm577_vm4, %v565_v62 }
  0x94   : > { %695 = vst.msk [vmem:[%s865_s24 + $0x3a8] sm:$0xff] %vm577_vm4, %v566_v1 }
  0x95   : > { %696 = vst.msk [vmem:[%s865_s24 + $0x3b0] sm:$0xff] %vm577_vm4, %v567_v4 }
  0x96   : > { %697 = vst.msk [vmem:[%s865_s24 + $0x3b8] sm:$0xff] %vm577_vm4, %v568_v8 }
  0x97   : > { %698 = vst.msk [vmem:[%s865_s24 + $0x3c0] sm:$0xff] %vm577_vm4, %v569_v11 }
  0x98   : > { %699 = vst.msk [vmem:[%s865_s24 + $0x3c8] sm:$0xff] %vm577_vm4, %v570_v14 }
  0x99   : > { %700 = vst.msk [vmem:[%s865_s24 + $0x3d0] sm:$0xff] %vm577_vm4, %v571_v16 }
  0x9a   : > { %701 = vst.msk [vmem:[%s865_s24 + $0x3d8] sm:$0xff] %vm577_vm4, %v572_v18 }
  0x9b   : > { %702 = vst.msk [vmem:[%s865_s24 + $0x3e0] sm:$0xff] %vm577_vm4, %v573_v21 }
  0x9c   : > { %703 = vst.msk [vmem:[%s865_s24 + $0x3e8] sm:$0xff] %vm577_vm4, %v574_v22 }
  0x9d   : > { %704 = vst.msk [vmem:[%s865_s24 + $0x3f0] sm:$0xff] %vm577_vm4, %v575_v5 }
  0x9e   : > { %705 = vst.msk [vmem:[%s865_s24 + $0x3f8] sm:$0xff] %vm577_vm4, %v576_v23 }
  0x9f PF: > { %s13_s12 = sadd.s32 1, %s793_s12  }
  0xa0   : > { %p10_p4 = scmp.ge.s32.totalorder %s13_s12, 6  }
  0xa2   :  { %12 = sbr.rel (!%p10_p4) target bundleno = 1 (0x1), region = 62 }

</bundles_post_ra>
